<compile_context>
chip_gen: v5e
topology: v5e:2x2
jax: 0.10.0
libtpu: 0.0.40
codegen_flags: <defaults>
</compile_context>

<pallas_src>
import jax
import jax.numpy as jnp
from jax.experimental import pallas as pl
from jax.experimental.pallas import tpu as pltpu

BN_EPS = 1e-5


# ---------------------------------------------------------------------------
# Pass 1: folded-conv matmul + per-tile BN partial statistics (sum, sum of squares).
# ---------------------------------------------------------------------------
def _stats_kernel(taps_ref, w_ref, stats_ref):
    # taps_ref: [K, T] (compute dtype), w_ref: [Cout, K] -> y: [Cout, T] f32 (MXU)
    y = jnp.dot(w_ref[...], taps_ref[...], preferred_element_type=jnp.float32)
    m = jnp.concatenate([y, y * y], axis=0)                  # [2*Cout, T]
    stats_ref[...] = jnp.sum(m, axis=1, keepdims=True)       # one reduction, one store


# ---------------------------------------------------------------------------
# Pass 2: recompute matmul with BN-pre-scaled weights and add the shift.
# ---------------------------------------------------------------------------
def _norm_kernel(taps_ref, wscaled_ref, shift_ref, out_ref):
    # wscaled = (gamma/sqrt(var+eps)) * W_fold^T  (pre-scaled in the wrapper, f32->compute)
    y = jnp.dot(wscaled_ref[...], taps_ref[...], preferred_element_type=jnp.float32)
    out_ref[...] = (y + shift_ref[...]).astype(out_ref.dtype)   # [Cout, T], lane-dense


def _round_up(v, m):
    return -(-v // m) * m


def _choose_tile_s(S, K, Cout, compute_bytes, out_bytes, target, vmem_budget):
    """Pick the spatial (lane-dim) tile size."""
    if S <= target:
        return _round_up(S, 16)                 # single tile covering the whole image
    tile = max((target // 128) * 128, 128)      # multi-tile -> lane dim must be 128-aligned

    def working_set(t):
        # double-buffered taps + out blocks, plus the (tiny) weight / shift operands
        return 2 * t * (K * compute_bytes + Cout * out_bytes) + 4 * K * Cout * 4

    while tile > 128 and working_set(tile) > vmem_budget:
        tile -= 128
    # Prefer a tile that divides S exactly (no output padding / post-slice copy), but
    # don't shrink below half of the budget-derived size.
    lo = max(tile // 2, 128)
    for cand in range(tile, lo - 1, -128):
        if S % cand == 0:
            return cand
    return tile


def input_unit_forward(x_nchw, w_dw, w_pw, gamma, beta, *,
                       compute_dtype=jnp.bfloat16, out_dtype=jnp.float32,
                       tile_target=4096):
    """x_nchw: [N, Cin, H, W]; w_dw: [Cin, 1, 3, 3]; w_pw: [Cout, Cin, 1, 1]."""
    N, Cin, H, W = x_nchw.shape
    Cout = w_pw.shape[0]
    # Conv2d(kernel=3, stride=2, padding=1) output size.
    Ho = (H + 2 - 3) // 2 + 1
    Wo = (W + 2 - 3) // 2 + 1
    S = Ho * Wo
    K = 9 * Cin

    # ---- channel-major im2col slab taps[N, 9*Cin, Ho*Wo] straight from NCHW ----
    xc = x_nchw.astype(compute_dtype)
    x_pad = jnp.pad(xc, ((0, 0), (0, 0), (1, 1), (1, 1)))
    cols = [x_pad[:, :, ky:ky + 2 * Ho:2, kx:kx + 2 * Wo:2]
            for ky in range(3) for kx in range(3)]            # 9 x [N, Cin, Ho, Wo]
    taps = jnp.stack(cols, axis=1).reshape(N, K, S)           # K index = k*Cin + c

    # ---- fold depthwise into pointwise: single [Cout, 9*Cin] matmul weight ----
    wdw = w_dw.reshape(Cin, 9).astype(jnp.float32)            # [c, k]
    wpw = w_pw.reshape(Cout, Cin).astype(jnp.float32)         # [o, c]
    w_fold = (wdw.T[:, :, None] * wpw.T[None, :, :]).reshape(K, Cout)   # [k*Cin+c, o]
    w_t = w_fold.T                                            # [Cout, K], f32

    # ---- spatial tiling ----
    cbytes = jnp.dtype(compute_dtype).itemsize
    obytes = jnp.dtype(out_dtype).itemsize
    tile_s = _choose_tile_s(S, K, Cout, cbytes, obytes, tile_target, 24 * 1024 * 1024)
    tiles_s = -(-S // tile_s)
    # v7x megacore: don't leave one TensorCore idle on a 1-step grid if the image can be
    # split into two lane-aligned (128-multiple) tiles.
    if N * tiles_s == 1 and S >= 256:
        tile_s = _round_up(-(-S // 2), 128)
        tiles_s = -(-S // tile_s)
    S_pad = tiles_s * tile_s
    if S_pad != S:
        taps = jnp.pad(taps, ((0, 0), (0, 0), (0, S_pad - S)))   # zero cols -> y == 0

    cparams = pltpu.CompilerParams(
        dimension_semantics=("parallel", "parallel"),   # v7x: shard grid across both TCs
        vmem_limit_bytes=32 * 1024 * 1024,              # explicit; safe on v5e/v6e/v7x
    )

    # ---- pass 1: per-tile partial BN statistics ----
    stats = pl.pallas_call(
        _stats_kernel,
        out_shape=jax.ShapeDtypeStruct((N, tiles_s, 2 * Cout, 1), jnp.float32),
        grid_spec=pltpu.PrefetchScalarGridSpec(
            num_scalar_prefetch=0,
            grid=(N, tiles_s),
            in_specs=[
                pl.BlockSpec((None, K, tile_s), lambda n, i: (n, 0, i)),
                pl.BlockSpec((Cout, K), lambda n, i: (0, 0)),
            ],
            out_specs=pl.BlockSpec((None, None, 2 * Cout, 1),
                                   lambda n, i: (n, i, 0, 0)),
        ),
        compiler_params=cparams,
    )(taps, w_t.astype(compute_dtype))

    # ---- tiny f32 finalize: mean/var -> BN folded into weights + shift ----
    sums = jnp.sum(stats, axis=(0, 1))[:, 0]                  # [2*Cout]
    cnt = float(N * S)                                        # TRUE element count
    mean = sums[:Cout] / cnt
    var = jnp.maximum(sums[Cout:] / cnt - mean * mean, 0.0)   # biased variance, clamped
    inv_std = jax.lax.rsqrt(var + BN_EPS)
    g32 = gamma.astype(jnp.float32)
    scale = g32 * inv_std                                     # [Cout]
    shift = (beta.astype(jnp.float32) - mean * scale).reshape(Cout, 1)
    w_scaled = (scale[:, None] * w_t).astype(compute_dtype)   # fold BN scale into weights

    # ---- pass 2: recompute matmul with pre-scaled weights, add shift, write NCHW ----
    out = pl.pallas_call(
        _norm_kernel,
        out_shape=jax.ShapeDtypeStruct((N, Cout, S_pad), out_dtype),
        grid_spec=pltpu.PrefetchScalarGridSpec(
            num_scalar_prefetch=0,
            grid=(N, tiles_s),
            in_specs=[
                pl.BlockSpec((None, K, tile_s), lambda n, i: (n, 0, i)),
                pl.BlockSpec((Cout, K), lambda n, i: (0, 0)),
                pl.BlockSpec((Cout, 1), lambda n, i: (0, 0)),
            ],
            out_specs=pl.BlockSpec((None, Cout, tile_s), lambda n, i: (n, 0, i)),
        ),
        compiler_params=cparams,
    )(taps, w_scaled, shift)

    if S_pad != S:
        out = out[:, :, :S]
    return out.reshape(N, Cout, Ho, Wo)                       # NCHW, no XLA transpose


def input_unit_reference(x_nchw, w_dw, w_pw, gamma, beta):
    """Pure-JAX f32 reference of the PyTorch forward (training-mode BN)."""
    Cin = x_nchw.shape[1]
    dw = jax.lax.conv_general_dilated(
        x_nchw, w_dw, window_strides=(2, 2), padding=((1, 1), (1, 1)),
        feature_group_count=Cin,
        dimension_numbers=("NCHW", "OIHW", "NCHW"))
    pw = jax.lax.conv_general_dilated(
        dw, w_pw, window_strides=(1, 1), padding="VALID",
        dimension_numbers=("NCHW", "OIHW", "NCHW"))
    mean = jnp.mean(pw, axis=(0, 2, 3), keepdims=True)
    var = jnp.mean((pw - mean) ** 2, axis=(0, 2, 3), keepdims=True)
    y = (pw - mean) / jnp.sqrt(var + BN_EPS)
    return gamma[None, :, None, None] * y + beta[None, :, None, None]


if __name__ == "__main__":
    N, Cin, H, W, Cout = 2, 4, 16, 16, 32
    key = jax.random.PRNGKey(0)
    k1, k2, k3, k4, k5 = jax.random.split(key, 5)

    x = jax.random.normal(k1, (N, Cin, H, W), jnp.float32)
    # Deterministic synthetic parameters (shapes match the PyTorch module's __init__).
    w_dw = 0.1 * jax.random.normal(k2, (Cin, 1, 3, 3), jnp.float32)       # depthwise
    w_pw = 0.1 * jax.random.normal(k3, (Cout, Cin, 1, 1), jnp.float32)    # pointwise
    gamma = 1.0 + 0.1 * jax.random.normal(k4, (Cout,), jnp.float32)       # BN weight
    beta = 0.1 * jax.random.normal(k5, (Cout,), jnp.float32)              # BN bias

    ref = input_unit_reference(x, w_dw, w_pw, gamma, beta)

    # f32 path: tight check that the folded-matmul / streamed-BN algorithm is exact.
    out_f32 = jax.block_until_ready(
        input_unit_forward(x, w_dw, w_pw, gamma, beta, compute_dtype=jnp.float32))
    assert out_f32.shape == (N, Cout, H // 2, W // 2), out_f32.shape
    assert jnp.allclose(out_f32, ref, atol=1e-3, rtol=1e-3), "f32 mismatch vs reference"

    # bf16 path (production config: halves taps HBM traffic): loose tolerance covers the
    # deliberate bf16 quantization of the MXU inputs; accumulation/BN stay in f32.
    out_bf16 = jax.block_until_ready(
        input_unit_forward(x, w_dw, w_pw, gamma, beta, compute_dtype=jnp.bfloat16))
    assert out_bf16.shape == (N, Cout, H // 2, W // 2), out_bf16.shape
    assert jnp.allclose(out_bf16, ref, atol=5e-2, rtol=5e-2), "bf16 mismatch vs reference"

    print("KERNEL_OK")
</pallas_src>

<mosaic_0001>
module attributes {stable_mosaic.version = 11 : i64} {
  func.func @_stats_kernel(%arg0: i32, %arg1: i32, %arg2: memref<1x36x64xf32, #tpu.memory_space<vmem>>, %arg3: memref<32x36xf32, #tpu.memory_space<vmem>>, %arg4: memref<1x1x64x1xf32, #tpu.memory_space<vmem>>) attributes {dimension_semantics = [#tpu.dimension_semantics<parallel>, #tpu.dimension_semantics<parallel>], iteration_bounds = array<i64: 2, 1>, scalar_prefetch = 0 : i64, scratch_operands = 0 : i64, tpu.core_type = #tpu.core_type<tc>, window_params = [{transform_indices = @transform_0, window_bounds = array<i64: 1, 36, 64>}, {pipeline_mode = #tpu.pipeline_mode<synchronous>, transform_indices = @transform_1, window_bounds = array<i64: 32, 36>}, {transform_indices = @transform_2, window_bounds = array<i64: 1, 1, 64, 1>}]} {
    %c0 = arith.constant 0 : index
    %c0_0 = arith.constant 0 : index
    %0 = vector.load %arg3[%c0, %c0_0] : memref<32x36xf32, #tpu.memory_space<vmem>>, vector<32x36xf32>
    %c0_1 = arith.constant 0 : index
    %c0_2 = arith.constant 0 : index
    %c0_3 = arith.constant 0 : index
    %1 = vector.load %arg2[%c0_1, %c0_2, %c0_3] : memref<1x36x64xf32, #tpu.memory_space<vmem>>, vector<1x36x64xf32>
    %2 = vector.shape_cast %1 : vector<1x36x64xf32> to vector<36x64xf32>
    %cst = arith.constant dense<0.000000e+00> : vector<32x64xf32>
    %3 = tpu.matmul %0, %2, %cst {dimension_numbers = #tpu.dot_dimension_numbers<[1], [0], [0], [1], [0, 0, 1, 1], [], []>} : vector<32x36xf32>, vector<36x64xf32>, vector<32x64xf32> -> vector<32x64xf32>
    %4 = arith.mulf %3, %3 : vector<32x64xf32>
    %5 = tpu.concatenate %3, %4 in 0 : vector<32x64xf32>, vector<32x64xf32> -> vector<64x64xf32>
    %cst_4 = arith.constant dense<0.000000e+00> : vector<64xf32>
    %6 = vector.multi_reduction <add>, %5, %cst_4 [1] : vector<64x64xf32> to vector<64xf32>
    %7 = vector.shape_cast %6 : vector<64xf32> to vector<64x1xf32>
    %c0_5 = arith.constant 0 : index
    %c0_6 = arith.constant 0 : index
    %c0_7 = arith.constant 0 : index
    %c0_8 = arith.constant 0 : index
    %8 = vector.load %arg4[%c0_5, %c0_6, %c0_7, %c0_8] : memref<1x1x64x1xf32, #tpu.memory_space<vmem>>, vector<1x1x64x1xf32>
    %9 = vector.shape_cast %8 : vector<1x1x64x1xf32> to vector<64x1xf32>
    %10 = vector.shape_cast %7 : vector<64x1xf32> to vector<1x1x64x1xf32>
    tpu.vector_store %arg4[%c0_5, %c0_6, %c0_7, %c0_8], %10 {strides = array<i32>} : memref<1x1x64x1xf32, #tpu.memory_space<vmem>>, vector<1x1x64x1xf32>,
    return
  }
  func.func @transform_0(%arg0: i32, %arg1: i32) -> (i32, i32, i32) {
    %c0_i32 = arith.constant 0 : i32
    %c0_i32_0 = arith.constant 0 : i32
    return %arg0, %c0_i32, %arg1 : i32, i32, i32
  }
  func.func @transform_1(%arg0: i32, %arg1: i32) -> (i32, i32) {
    %c0_i32 = arith.constant 0 : i32
    %c0_i32_0 = arith.constant 0 : i32
    %c0_i32_1 = arith.constant 0 : i32
    return %c0_i32, %c0_i32_0 : i32, i32
  }
  func.func @transform_2(%arg0: i32, %arg1: i32) -> (i32, i32, i32, i32) {
    %c0_i32 = arith.constant 0 : i32
    %c0_i32_0 = arith.constant 0 : i32
    %c0_i32_1 = arith.constant 0 : i32
    return %arg0, %arg1, %c0_i32, %c0_i32_0 : i32, i32, i32, i32
  }
}

</mosaic_0001>

<bundles_post_ra>
// kernel: tpu_custom_call.1
= control target key start
LH: loop header
LB: loop body
LE: loop exit
PB: predicated region body
PF: predicated region fallthrough
CT: control target
= control target key end

     0   :  { %s454_s9 = smov 0   ;;  %s456_s10 = smov 0   ;;  %s519_s0 = inlined_call_operand.vmem [shape: f32[2,36,64], index: 0, kind: input, shape index: {}]   ;;  %s520_s1 = inlined_call_operand.vmem [shape: f32[32,36], index: 1, kind: input, shape index: {}]   ;;  %s521_s2 = inlined_call_operand.vmem [shape: f32[2,1,64,1], index: 2, kind: output, shape index: {}]  }
   0x1   :  { %s458_s11 = smov 0  }
   0x2 LB: > { %s24_s12 = sadd.s32 1, %s433_s10  ;;  %p363_p0 = scmp.ge.s32.totalorder %s437_s11, 1  ;;  %s437_s11 = sphi %s458_s11, %s12_s11   ;;  %s433_s10 = sphi %s456_s10, %s523_s10   ;;  %s429_s9 = sphi %s454_s9, %s522_s9  }
   0x3   : > { %p26_p1 = scmp.ge.s32.totalorder %s24_s12, 2  ;;  %p131_p2 = scmp.lt.s32.totalorder %s437_s11, 3 }
   0x5   : > { %s525_s12 = smov (%p26_p1, %s24_s12), 0  ;;  %p132_p3 = pnand %p363_p0, %p131_p2 }
   0x6   : > { %p160_p4 = scmp.lt.s32.totalorder (!%p132_p3), %s429_s9, 1 }
   0x7   : > { %135 = sbr.rel (%p132_p3) target bundleno = 292 (0x124), region = 28 }
   0xc   : > { %s527_s9 = smov (!%p160_p4, %s429_s9), 1  ;;  %vm199_vm0 = vcmask 1043456   ;;  %v177_v5 = vld [vmem:[%s520_s1] sm:$0xff]  ;;  %vm186_vm1 = vcmask 293888   ;;  %v179_v6 = vld [vmem:[%s520_s1 + $0x10] sm:$0xff]  ;;  %v178_v7 = vld [vmem:[%s520_s1 + $0x8] sm:$0xff] }
   0xd   : > { %s390_s13 = smul.u32 40, %s527_s9  ;;  %v180_v8 = vld [vmem:[%s520_s1 + $0x18] sm:$0xff]  ;;  %vm236_vm2 = vcmask 523264   ;;  %s374_s25 = sshll.u32 %s527_s9, 6  ;;  %vm261_vm3 = vcmask 7168  }
   0xe   : > { %s176_s28 = scalar_lea.vmem %s521_s2, %s374_s25 }
   0xf   : > { %s167_s16 = scalar_lea.vmem %s519_s0, %s390_s13 }
  0x10   : > { %v185_v0 = vld [vmem:[%s167_s16 + $0x20] sm:$0xf]  ;;  %v184_v1 = vld [vmem:[%s167_s16 + $0x18] sm:$0xff]  ;;  %v183_v2 = vld [vmem:[%s167_s16 + $0x10] sm:$0xff] }
  0x11   : > { %367 = vmatpush.msk.msra.mxu0 %vm199_vm0, %v185_v0  ;;  %376 = vmatpush.msk.msra.mxu2 %vm199_vm0, %v185_v0  ;;  %v182_v3 = vld [vmem:[%s167_s16 + $0x8] sm:$0xff]  ;;  %v181_v4 = vld [vmem:[%s167_s16] sm:$0xff] }
  0x12   : > { %375 = vmatpush.msk.msra.mxu1 %vm199_vm0, %v185_v0  ;;  %377 = vmatpush.msk.msra.mxu3 %vm199_vm0, %v185_v0 }
  0x13   : > { %215 = vmatpush.msra.mxu0 %v184_v1  ;;  %379 = vmatpush.msra.mxu2 %v184_v1 }
  0x14   : > { %378 = vmatpush.msra.mxu1 %v184_v1  ;;  %380 = vmatpush.msra.mxu3 %v184_v1 }
  0x15   : > { %216 = vmatpush.msra.mxu0 %v183_v2  ;;  %382 = vmatpush.msra.mxu2 %v183_v2 }
  0x16   : > { %381 = vmatpush.msra.mxu1 %v183_v2  ;;  %383 = vmatpush.msra.mxu3 %v183_v2 }
  0x17   : > { %217 = vmatpush.msra.mxu0 %v182_v3  ;;  %385 = vmatpush.msra.mxu2 %v182_v3 }
  0x18   : > { %384 = vmatpush.msra.mxu1 %v182_v3  ;;  %386 = vmatpush.msra.mxu3 %v182_v3 }
  0x19   : > { %218 = vmatpush.msra.mxu0 %v181_v4  ;;  %388 = vmatpush.msra.mxu2 %v181_v4 }
  0x1a   : > { %368 = vmatmul.msk.f32.vlgmr.msra.gmra.mxu0 %vm186_vm1, %v177_v5  ;;  %370 = vmatmul.msk.f32.vlgmr.msra.gmra.mxu2 %vm186_vm1, %v179_v6 }
  0x1b   : > { %387 = vmatpush.msra.mxu1 %v181_v4  ;;  %389 = vmatpush.msra.mxu3 %v181_v4 }
  0x1c   : > { %369 = vmatmul.msk.f32.vlgmr.msra.gmra.mxu1 %vm186_vm1, %v178_v7  ;;  %371 = vmatmul.msk.f32.vlgmr.msra.gmra.mxu3 %vm186_vm1, %v180_v8 }
  0x97   : > { %v220_v9 = vpop.f32.mrf.mxu0 }
  0x98   : > { %v232_v10 = vmul.f32 %v220_v9, %v220_v9  ;;  %v237_v11 = vsel %vm236_vm2, %v220_v9, 0.0 }
  0x99   : > { %238 = vadd.xlane.f32.xlu0 %v237_v11  ;;  %v223_v13 = vpop.f32.mrf.mxu1 }
  0x9a   : > { %v249_v12 = vsel %vm236_vm2, %v232_v10, 0.0  ;;  %v233_v14 = vmul.f32 %v223_v13, %v223_v13  ;;  %v240_v17 = vsel %vm236_vm2, %v223_v13, 0.0 }
  0x9b   : > { %250 = vadd.xlane.f32.xlu2 %v249_v12 }
  0x9c   : > { %v252_v18 = vsel %vm236_vm2, %v233_v14, 0.0 }
  0x9d   : > { %v226_v15 = vpop.f32.mrf.mxu2 }
  0x9e   : > { %v243_v16 = vsel %vm236_vm2, %v226_v15, 0.0  ;;  %v234_v20 = vmul.f32 %v226_v15, %v226_v15 }
  0x9f   : > { %244 = vadd.xlane.f32.xlu1 %v243_v16  ;;  %v229_v19 = vpop.f32.mrf.mxu3 }
  0xa0   : > { %v246_v21 = vsel %vm236_vm2, %v229_v19, 0.0  ;;  %v255_v22 = vsel %vm236_vm2, %v234_v20, 0.0  ;;  %v235_v23 = vmul.f32 %v229_v19, %v229_v19 }
  0xa1   : > { %241 = vadd.xlane.f32.xlu0 %v240_v17 }
  0xa2   : > { %v258_v24 = vsel %vm236_vm2, %v235_v23, 0.0 }
  0xa3   : > { %253 = vadd.xlane.f32.xlu2 %v252_v18 }
  0xa7   : > { %247 = vadd.xlane.f32.xlu1 %v246_v21 }
  0xa9   : > { %256 = vadd.xlane.f32.xlu0 %v255_v22 }
  0xaf   : > { %259 = vadd.xlane.f32.xlu1 %v258_v24 }
 0x10c   : > { %v239_v25 = vpop.xlane.xlu0 %238 }
 0x10d   : > { %262 = vst.msk [vmem:[%s176_s28] sm:$0xff] %vm261_vm3, %v239_v25 }
 0x10e   : > { %v251_v26 = vpop.xlane.xlu2 %250 }
 0x10f   : > { %266 = vst.msk [vmem:[%s176_s28 + $0x20] sm:$0xff] %vm261_vm3, %v251_v26 }
 0x112   : > { %v245_v27 = vpop.xlane.xlu1 %244 }
 0x113   : > { %264 = vst.msk [vmem:[%s176_s28 + $0x10] sm:$0xff] %vm261_vm3, %v245_v27 }
 0x114   : > { %v242_v28 = vpop.xlane.xlu0 %241 }
 0x115   : > { %263 = vst.msk [vmem:[%s176_s28 + $0x8] sm:$0xff] %vm261_vm3, %v242_v28 }
 0x116   : > { %v254_v29 = vpop.xlane.xlu2 %253 }
 0x117   : > { %267 = vst.msk [vmem:[%s176_s28 + $0x28] sm:$0xff] %vm261_vm3, %v254_v29 }
 0x11a   : > { %v248_v30 = vpop.xlane.xlu1 %247 }
 0x11b   : > { %265 = vst.msk [vmem:[%s176_s28 + $0x18] sm:$0xff] %vm261_vm3, %v248_v30 }
 0x11c   : > { %v257_v31 = vpop.xlane.xlu0 %256 }
 0x11d   : > { %268 = vst.msk [vmem:[%s176_s28 + $0x30] sm:$0xff] %vm261_vm3, %v257_v31 }
 0x122   : > { %v260_v32 = vpop.xlane.xlu1 %259 }
 0x123   : > { %269 = vst.msk [vmem:[%s176_s28 + $0x38] sm:$0xff] %vm261_vm3, %v260_v32 }
 0x124 PF: > { %s12_s11 = sadd.s32 1, %s437_s11   ;;  %s522_s9 = smov %s433_s10 }
 0x125   : > { %p9_p5 = scmp.ge.s32.totalorder %s12_s11, 4   ;;  %s523_s10 = smov %s525_s12 }
 0x127   :  { %11 = sbr.rel (!%p9_p5) target bundleno = 2 (0x2), region = 58 }

</bundles_post_ra>
